<compile_context>
chip_gen: v7x
topology: tpu7x:2x2x1
jax: 0.10.0
libtpu: 0.0.40
codegen_flags: <defaults>
</compile_context>

<pallas_src>
import jax
import jax.numpy as jnp
from jax.experimental import pallas as pl
from jax.experimental.pallas import tpu as pltpu


def _round_up(n, m):
    return ((n + m - 1) // m) * m


def _linear_kernel(x_ref, w_ref, b_ref, o_ref):
    # x_ref: (bm, F), w_ref: (F, C), b_ref: (1, C), o_ref: (bm, C)
    acc = jnp.dot(x_ref[...], w_ref[...], preferred_element_type=jnp.float32)
    o_ref[...] = (acc + b_ref[...].astype(jnp.float32)).astype(o_ref.dtype)


def simple_linear_forward(x, weight, bias, *, block_m=8192,
                          min_pallas_batch=4096, force_pallas=False):
    """y = x @ weight.T + bias  (torch nn.Linear forward).

    x:      (B, F)  float32 or bfloat16
    weight: (C, F)  torch Linear layout
    bias:   (C,)
    """
    B, F = x.shape
    C, F2 = weight.shape
    assert F == F2, "weight must be (num_classes, input_features)"

    # At small B the kernel can only lose to XLA fusion (dispatch + fixed
    # per-step pipeline cost dominate); gate unless explicitly forced.
    if B < min_pallas_batch and not force_pallas:
        y = jnp.dot(x, weight.T, preferred_element_type=jnp.float32)
        return (y + bias.astype(jnp.float32)).astype(x.dtype)

    weight_t = weight.T            # (F, C): tiny, VMEM-resident for the whole grid
    bias_2d = bias.reshape(1, C)   # (1, C)

    # Batch tile: multiple of 8 sublanes, no larger than the batch requires.
    bm = max(8, min(_round_up(block_m, 8), _round_up(B, 8)))
    grid = (pl.cdiv(B, bm),)       # edge block handled by Pallas (no jnp.pad)

    # VMEM footprint estimate (minor dim lane-pads to 128):
    #   x / out tiles are double-buffered, weight / bias single-buffered.
    lane = 128
    est = (2 * bm * _round_up(F, lane) * x.dtype.itemsize
           + 2 * bm * _round_up(C, lane) * x.dtype.itemsize
           + _round_up(F, 8) * _round_up(C, lane) * weight_t.dtype.itemsize
           + 8 * _round_up(C, lane) * bias_2d.dtype.itemsize)
    vmem_limit = int(est * 1.5) + (2 << 20)

    cp_kwargs = dict(
        # v7x: 2 TCs share the batch axis; v5e/v6e: single TC, annotation is a
        # no-op.  Switch to pltpu.CORE_PARALLEL if a profile shows an idle TC.
        dimension_semantics=("parallel",),
    )
    if vmem_limit > (16 << 20):
        # Only raise the scoped limit when the tile actually needs it; cap with
        # headroom under v7x's 64 MiB physical VMEM.
        cp_kwargs["vmem_limit_bytes"] = min(vmem_limit, 56 << 20)

    out = pl.pallas_call(
        _linear_kernel,
        out_shape=jax.ShapeDtypeStruct((B, C), x.dtype),
        grid=grid,
        in_specs=[
            # x: one batch tile per grid step.
            pl.BlockSpec((bm, F), lambda i: (i, 0)),
            # weight / bias: same block every step -> VMEM-resident, single buffer.
            pl.BlockSpec((F, C), lambda i: (0, 0), pipeline_mode=pl.Buffered(1)),
            pl.BlockSpec((1, C), lambda i: (0, 0), pipeline_mode=pl.Buffered(1)),
        ],
        out_specs=pl.BlockSpec((bm, C), lambda i: (i, 0)),
        compiler_params=pltpu.CompilerParams(**cp_kwargs),
    )(x, weight_t, bias_2d)

    return out


if __name__ == "__main__":
    input_features = 20
    num_classes = 5
    batch = 8

    key = jax.random.PRNGKey(0)
    k_x, k_w, k_b = jax.random.split(key, 3)

    # Deterministic parameter init mimicking nn.Linear's U(-1/sqrt(F), 1/sqrt(F)).
    bound = 1.0 / (input_features ** 0.5)
    weight = jax.random.uniform(
        k_w, (num_classes, input_features), jnp.float32, -bound, bound
    )  # torch layout: (num_classes, input_features)
    bias = jax.random.uniform(k_b, (num_classes,), jnp.float32, -bound, bound)

    x = jax.random.normal(k_x, (batch, input_features), jnp.float32)

    # Force the Pallas path so the kernel itself is exercised at this demo size
    # (the production gate would hand B=8 to XLA fusion).
    out = simple_linear_forward(x, weight, bias, force_pallas=True)
    out = jax.block_until_ready(out)

    # Sanity check against plain JAX reference (same math as torch Linear).
    ref = x @ weight.T + bias
    assert out.shape == (batch, num_classes)
    assert jnp.allclose(out, ref, atol=1e-5, rtol=1e-5), "mismatch vs reference"

    print("KERNEL_OK")
</pallas_src>

<mosaic_0001>
module attributes {stable_mosaic.version = 11 : i64} {
  func.func @_linear_kernel(%arg0: i32, %arg1: memref<8x20xf32, #tpu.memory_space<vmem>>, %arg2: memref<20x5xf32, #tpu.memory_space<vmem>>, %arg3: memref<1x5xf32, #tpu.memory_space<vmem>>, %arg4: memref<8x5xf32, #tpu.memory_space<vmem>>) attributes {dimension_semantics = [#tpu.dimension_semantics<parallel>], iteration_bounds = array<i64: 1>, scalar_prefetch = 0 : i64, scratch_operands = 0 : i64, tpu.core_type = #tpu.core_type<tc>, window_params = [{transform_indices = @transform_0, window_bounds = array<i64: 8, 20>}, {pipeline_mode = #tpu.pipeline_mode<synchronous>, transform_indices = @transform_1, window_bounds = array<i64: 20, 5>}, {pipeline_mode = #tpu.pipeline_mode<synchronous>, transform_indices = @transform_2, window_bounds = array<i64: 1, 5>}, {transform_indices = @transform_3, window_bounds = array<i64: 8, 5>}]} {
    %c0 = arith.constant 0 : index
    %c0_0 = arith.constant 0 : index
    %0 = vector.load %arg1[%c0, %c0_0] : memref<8x20xf32, #tpu.memory_space<vmem>>, vector<8x20xf32>
    %c0_1 = arith.constant 0 : index
    %c0_2 = arith.constant 0 : index
    %1 = vector.load %arg2[%c0_1, %c0_2] : memref<20x5xf32, #tpu.memory_space<vmem>>, vector<20x5xf32>
    %cst = arith.constant dense<0.000000e+00> : vector<8x5xf32>
    %2 = tpu.matmul %0, %1, %cst {dimension_numbers = #tpu.dot_dimension_numbers<[1], [0], [0], [1], [0, 0, 1, 1], [], []>} : vector<8x20xf32>, vector<20x5xf32>, vector<8x5xf32> -> vector<8x5xf32>
    %c0_3 = arith.constant 0 : index
    %c0_4 = arith.constant 0 : index
    %3 = vector.load %arg3[%c0_3, %c0_4] : memref<1x5xf32, #tpu.memory_space<vmem>>, vector<1x5xf32>
    %4 = vector.broadcast %3 : vector<1x5xf32> to vector<8x5xf32>
    %5 = arith.addf %2, %4 : vector<8x5xf32>
    %c0_5 = arith.constant 0 : index
    %c0_6 = arith.constant 0 : index
    %6 = vector.load %arg4[%c0_5, %c0_6] : memref<8x5xf32, #tpu.memory_space<vmem>>, vector<8x5xf32>
    tpu.vector_store %arg4[%c0_5, %c0_6], %5 {strides = array<i32>} : memref<8x5xf32, #tpu.memory_space<vmem>>, vector<8x5xf32>,
    return
  }
  func.func @transform_0(%arg0: i32) -> (i32, i32) {
    %c0_i32 = arith.constant 0 : i32
    %c0_i32_0 = arith.constant 0 : i32
    return %arg0, %c0_i32 : i32, i32
  }
  func.func @transform_1(%arg0: i32) -> (i32, i32) {
    %c0_i32 = arith.constant 0 : i32
    %c0_i32_0 = arith.constant 0 : i32
    %c0_i32_1 = arith.constant 0 : i32
    return %c0_i32, %c0_i32_0 : i32, i32
  }
  func.func @transform_2(%arg0: i32) -> (i32, i32) {
    %c0_i32 = arith.constant 0 : i32
    %c0_i32_0 = arith.constant 0 : i32
    %c0_i32_1 = arith.constant 0 : i32
    return %c0_i32, %c0_i32_0 : i32, i32
  }
  func.func @transform_3(%arg0: i32) -> (i32, i32) {
    %c0_i32 = arith.constant 0 : i32
    %c0_i32_0 = arith.constant 0 : i32
    return %arg0, %c0_i32 : i32, i32
  }
}

</mosaic_0001>

<bundles_post_ra>
// kernel: tpu_custom_call.1
= control target key start
LH: loop header
LB: loop body
LE: loop exit
PB: predicated region body
PF: predicated region fallthrough
CT: control target
= control target key end

     0   :  { %v167_v2 = vmov 0.0|0.0   ;;  %vm168_vm0 = vmmov 0   ;;  %v169_v4 = vmov 0.0   ;;  %s218_s0 = inlined_call_operand.vmem [shape: f32[8,20], index: 0, kind: input, shape index: {}]   ;;  %s219_s1 = inlined_call_operand.vmem [shape: f32[20,5], index: 1, kind: input, shape index: {}]   ;;  %s220_s2 = inlined_call_operand.vmem [shape: f32[1,5], index: 2, kind: input, shape index: {}]   ;;  %s221_s3 = inlined_call_operand.hbm [shape: f32[8,5], index: 3, kind: output, shape index: {}]  }
   0x1   :  { %v16_v0 = vld [vmem:[%s219_s1] sm:$0xff]  ;;  %v17_v1 = vld [vmem:[%s219_s1 + $0x8] sm:$0xff]  ;;  %136 = vmatprep.subr.bf16.mxu0 %v167_v2  ;;  %133 = vmatprep.mubr.msk.f32.mxu0 %vm168_vm0, %v169_v4 }
   0x2   :  { %v137_v3 = vpack.c.bf16 %v17_v1, %v16_v0 }
   0x3   :  { %8 = vsyncpa [#allocation3], 0  ;;  %v18_v5 = vld [vmem:[%s219_s1 + $0x10] sm:$0xf]  ;;  %vm30_vm1 = vcmask 1043456   ;;  %v15_v6 = vld [vmem:[%s218_s0] sm:$0xff] }
   0x4   :  { %138 = vmatpush3.bf16.msra.mxu0 %v137_v3  ;;  %vm26_vm2 = vcmask 162816   ;;  %v120_v7 = vld [vmem:[%s220_s2] ss:$0 sm:$0xff]  ;;  %s170_s22 = smov [#allocation2]   ;;  %vm104_vm3 = vcmask 39936  }
   0x5   :  { %131 = vmatprep.subr.mxu0 %v169_v4  ;;  %s112_s23 = sshll.u32 %s170_s22, 4  ;;  %s113_s23 = int_to_ptr.vmem [resolvable:$true] %s112_s23 }
   0x6   :  { %s143_s1 = scalar_lea.vmem %s113_s23, 128  ;;  %p148_p1 = scmp.lt.s32.totalorder %s113_s23, %s113_s23 }
   0x7   :  { %p144_p0 = scmp.ne.s32.totalorder %s113_s23, %s143_s1  ;;  %p149_p2 = scmp.lt.s32.totalorder %s143_s1, %s143_s1 }
   0x8   :  { %132 = vmatpush3.msk.msra.mxu0 %vm30_vm1, %v18_v5 }
   0x9   :  { %134 = vmatmul.mubr.msk.f32.vlgmr.msra.gmra.mrb[0].mxu0 %vm26_vm2, %v15_v6  ;;  %p150_p3 = por %p149_p2, %p148_p1 }
   0xb   :  { %p151_p4 = pnand %p150_p3, %p144_p0 }
  0xdc   :  { %v100_v8 = vpop.f32.mrb[0].mxu0 }
  0xdd   :  { %v101_v9 = vadd.f32 %v120_v7, %v100_v8  ;;  %v135_v10 = vpop.f32.mrb[1].mxu0 }
  0xdf   :  { %105 = vst.msk [vmem:[#allocation2] sm:$0xff] %vm104_vm3, %v101_v9 }
  0xe0   :  { %154 = shalt.err (!%p151_p4)
}
  0xe1   :  { %s155_s25 = scalar_lea.hbm %s221_s3, 128 }
  0xe2   :  { %p156_p5 = scmp.ne.s32.totalorder %s221_s3, %s155_s25  ;;  %p159_p6 = scmp.lt.u32.totalorder %s155_s25, %s221_s3 }
  0xe4   :  { %p161_p7 = pnand %p159_p6, %p156_p5 }
  0xe6   :  { %164 = shalt.err (!%p161_p7)
}
  0xe7   :  { %115 = dma.vmem_to_hbm [thread:$0]  %s113_s23, 128, %s221_s3, [#allocation3]  }
  0xe8   :  { %165 = dma.done.wait [#allocation3], 128  }
  0xe9   :  { %166 = vsyncadd [#allocation3], 4294967168 }
  0xea   :  { %119 = vsyncpa [#allocation3], 1 }

</bundles_post_ra>
